<compile_context>
chip_gen: v7x
topology: tpu7x:2x2x1
jax: 0.10.0
libtpu: 0.0.40
codegen_flags: <defaults>
</compile_context>

<pallas_src>
import jax
import jax.numpy as jnp
from jax.experimental import pallas as pl
from jax.experimental.pallas import tpu as pltpu


def _dma_squeeze_copy_kernel(x_ref, o_ref, sem):
    # x_ref / o_ref: raw (ANY/HBM) refs of identical shape & dtype.
    # Pure DMA copy — never touches VMEM tiles, vld/vst slots or the VPU.
    cp = pltpu.make_async_copy(x_ref, o_ref, sem)
    cp.start()
    cp.wait()


def squeeze_layer(x: jax.Array, dim: int = 1) -> jax.Array:
    """Canonical SqueezeLayer.forward: metadata-only, zero bytes moved."""
    d = dim + x.ndim if dim < 0 else dim
    if x.shape[d] != 1:
        # torch.squeeze(dim) is a no-op when the dim is not size 1.
        return x
    return jnp.squeeze(x, axis=d)


def squeeze_layer_pallas(x: jax.Array, dim: int = 1) -> jax.Array:
    """SqueezeLayer.forward with a mandated Pallas kernel.

    The squeeze itself is a free contiguous reshape done wrapper-side (layout
    plumbing, per review); the kernel is a single whole-array HBM->HBM DMA.
    """
    d = dim + x.ndim if dim < 0 else dim
    if x.shape[d] != 1:
        return x

    out_shape = tuple(s for i, s in enumerate(x.shape) if i != d)
    # Free metadata view with the squeezed shape so src/dst shapes match the
    # DMA's shape check; no data movement happens here.
    x_view = jnp.reshape(x, out_shape)

    return pl.pallas_call(
        _dma_squeeze_copy_kernel,
        out_shape=jax.ShapeDtypeStruct(out_shape, x.dtype),
        in_specs=[pl.BlockSpec(memory_space=pl.ANY)],   # raw HBM ref, no auto-DMA
        out_specs=pl.BlockSpec(memory_space=pl.ANY),    # raw HBM ref, no auto-DMA
        scratch_shapes=[pltpu.SemaphoreType.DMA(())],
    )(x_view)


if __name__ == "__main__":
    key = jax.random.PRNGKey(0)
    # SqueezeLayer(dim=1) expects a size-1 axis at dim=1: (N, 1, H, W)
    x = jax.random.normal(key, (2, 1, 16, 16), dtype=jnp.float32)
    ref = jnp.squeeze(x, axis=1)

    # Fast (metadata-only) path — what the module forward maps to.
    y_fast = jax.block_until_ready(squeeze_layer(x, dim=1))

    # Mandated Pallas-kernel path (single HBM->HBM DMA).
    y_pallas = jax.block_until_ready(squeeze_layer_pallas(x, dim=1))

    assert y_fast.shape == (2, 16, 16), y_fast.shape
    assert y_pallas.shape == (2, 16, 16), y_pallas.shape
    assert y_pallas.dtype == x.dtype
    assert bool(jnp.array_equal(y_fast, ref))
    assert bool(jnp.array_equal(y_pallas, ref))

    # No-op case (torch semantics): dim size != 1 -> input returned unchanged.
    x2 = jax.random.normal(jax.random.PRNGKey(1), (2, 4, 16, 16), jnp.float32)
    y2 = jax.block_until_ready(squeeze_layer_pallas(x2, dim=1))
    assert y2.shape == (2, 4, 16, 16)
    assert bool(jnp.array_equal(y2, x2))

    print("KERNEL_OK")
</pallas_src>

<mosaic_0001>
module attributes {stable_mosaic.version = 11 : i64} {
  func.func @_dma_squeeze_copy_kernel(%arg0: memref<2x16x16xf32, #tpu.memory_space<any>>, %arg1: memref<2x16x16xf32, #tpu.memory_space<any>>, %arg2: memref<!tpu.dma_semaphore, #tpu.memory_space<semaphore_mem>>) attributes {dimension_semantics = [], scalar_prefetch = 0 : i64, scratch_operands = 1 : i64, tpu.core_type = #tpu.core_type<tc>} {
    tpu.enqueue_dma source(%arg0 : memref<2x16x16xf32, #tpu.memory_space<any>>) target(%arg1 : memref<2x16x16xf32, #tpu.memory_space<any>>) target_semaphore(%arg2 : memref<!tpu.dma_semaphore, #tpu.memory_space<semaphore_mem>>)
    tpu.wait_dma2 semaphore(%arg2 : memref<!tpu.dma_semaphore, #tpu.memory_space<semaphore_mem>>) src(%arg0 : memref<2x16x16xf32, #tpu.memory_space<any>>) dst(%arg1 : memref<2x16x16xf32, #tpu.memory_space<any>>)
    return
  }
}

</mosaic_0001>

<bundles_post_ra>
// kernel: tpu_custom_call.1
= control target key start
LH: loop header
LB: loop body
LE: loop exit
PB: predicated region body
PF: predicated region fallthrough
CT: control target
= control target key end

     0   :  { %s35_s6 = smov [#allocation2]   ;;  %s36_s7 = smov [#allocation3]   ;;  %s54_s0 = inlined_call_operand.hbm [shape: f32[2,16,16], index: 0, kind: input, shape index: {}]   ;;  %s55_s1 = inlined_call_operand.hbm [shape: f32[2,16,16], index: 1, kind: output, shape index: {}]  }
   0x1   :  { %s37_s8 = smov 0  }
   0x2   :  { %18 = dma.general %s54_s0, 512, %s55_s1, %s35_s6, %s36_s7, [#allocation4], %s37_s8, 0  }
   0x3   :  { %33 = dma.done.wait [#allocation2], 512 }
   0x4   :  { %34 = vsyncadd [#allocation2], 4294966784 }
   0x5   :  { %23 = vsyncmov [#allocation2] }
   0x8   :  { %s24_s13 = vpop.sfrf %23 }
   0x9   :  { %p29_p0 = scmp.ne.s32.totalorder %s24_s13, 0 }
   0xb   :  { %28 = shalt.err (%p29_p0)  }

</bundles_post_ra>
